<compile_context>
chip_gen: v6e
topology: v6e:2x2x1
jax: 0.10.0
libtpu: 0.0.40
codegen_flags: <defaults>
</compile_context>

<pallas_src>
import functools

import jax
import jax.numpy as jnp
from jax.experimental import pallas as pl
from jax.experimental.pallas import tpu as pltpu


def _gelu_new(x):
    # HF "gelu_new": 0.5*x*(1 + tanh(sqrt(2/pi)*(x + 0.044715*x^3)))
    c = 0.7978845608028654  # sqrt(2/pi)
    return 0.5 * x * (1.0 + jnp.tanh(c * (x + 0.044715 * x * x * x)))


def _t5_ff_kernel(x_ref, lnw_ref, wi01_ref, wo_ref, o_ref,
                  norm_ref, acc_ref, *, eps, tf):
    """One (token-tile i, d_ff-tile f) grid step.

    x_ref:    (tm, D)     residual-stream token tile
    lnw_ref:  (1, D)      T5LayerNorm scale
    wi01_ref: (D, 2*tf)   [wi_0 slice | wi_1 slice] fused gate/linear weights
    wo_ref:   (tf, D)     output-projection slice
    o_ref:    (tm, D)     output tile (resident across the f axis)
    norm_ref: (tm, D)     cached RMS-normed tokens in matmul dtype (VMEM scratch)
    acc_ref:  (tm, D)     f32 accumulator, pre-loaded with the residual
    """
    f = pl.program_id(1)

    @pl.when(f == 0)
    def _():
        # RMS norm (T5LayerNorm: no mean subtraction) once per token tile.
        x = x_ref[...].astype(jnp.float32)
        var = jnp.mean(x * x, axis=-1, keepdims=True)
        norm = x * jax.lax.rsqrt(var + eps)
        lnw = lnw_ref[...]
        if jnp.dtype(lnw.dtype).itemsize == 2:
            # HF T5LayerNorm casts to the half-precision weight dtype *before*
            # multiplying by the scale.
            norm = norm.astype(lnw.dtype)
        norm = norm * lnw
        norm_ref[...] = norm.astype(norm_ref.dtype)
        # Fold the residual into the accumulator init (saves the zero-fill and an
        # extra (tm, D) read + add in the last-step epilogue).
        acc_ref[...] = x

    norm = norm_ref[...]
    # Single fused matmul for the gate and linear projections, then split.
    h = jnp.dot(norm, wi01_ref[...], preferred_element_type=jnp.float32)
    h = _gelu_new(h[:, :tf]) * h[:, tf:]
    acc_ref[...] += jnp.dot(h.astype(wo_ref.dtype), wo_ref[...],
                            preferred_element_type=jnp.float32)

    @pl.when(f == pl.num_programs(1) - 1)
    def _():
        # Residual already in acc; dropout = identity in eval mode.
        o_ref[...] = acc_ref[...].astype(o_ref.dtype)


def _round_up(x, m):
    return ((x + m - 1) // m) * m


def _cdiv(a, b):
    return -(-a // b)


def t5_layer_ff(hidden_states, ln_weight, wi0, wi1, wo, *,
                eps=1e-6, tm=512, tf=512, weights_dtype=None,
                weight_buffers=2):
    """T5LayerFF forward (eval mode, no adapters/LoRA/IA3, dropout = identity).

    hidden_states: [B, S, D]; ln_weight: [D]; wi0/wi1: [D, F] (transpose of the
    PyTorch nn.Linear weight); wo: [F, D].

    Tuning: tm is the primary lever (weight HBM traffic ~ T/tm): ~1024 on v6e,
    512-768 on v7x, 384-512 on v5e.  Keep tf at 512-1024; it does not reduce HBM
    traffic, it only widens the streamed slice.  Pass weights_dtype=jnp.bfloat16
    when the model ships f32 weights (fp8 on v7x is a further option).  Use
    weight_buffers=3 only if a profile shows exposed DMA at token-tile seams.
    """
    B, S, D = hidden_states.shape
    F = wi0.shape[1]
    T = B * S

    if weights_dtype is not None:
        wi0 = wi0.astype(weights_dtype)
        wi1 = wi1.astype(weights_dtype)
        wo = wo.astype(weights_dtype)

    xbytes = jnp.dtype(hidden_states.dtype).itemsize
    wbytes = jnp.dtype(wi0.dtype).itemsize
    lbytes = jnp.dtype(ln_weight.dtype).itemsize

    # ---- physical-VMEM-aware budget (v7x: 64 MiB/TC; v5e/v6e: 128 MiB) ----
    try:
        phys_vmem = int(pltpu.get_tpu_info().vmem_capacity_bytes)
    except Exception:
        phys_vmem = 64 * 1024 * 1024  # conservative fallback (v7x per-TC VMEM)
    vmem_cap = phys_vmem - 8 * 1024 * 1024  # headroom for Mosaic internal scratch

    # ---- tile selection (pad instead of divisor-hunting) ----
    # Token tile: second-to-last block dim -> multiple of 8 (or the full axis).
    tm = max(8, min(_round_up(int(tm), 8), _round_up(T, 8)))
    if _cdiv(T, tm) == 1 and T > 256:
        # Keep >= 2 token tiles so the "parallel" axis can split across v7x's
        # two TensorCores.
        tm = _round_up(_cdiv(T, 2), 8)

    # d_ff tile: 2*tf (wi01 lane dim) must be a multiple of 128 and tf a
    # multiple of 8 (wo sublane dim), unless tf covers the whole (padded) F.
    tf = int(tf)
    if F <= tf:
        tf = F
    else:
        tf = max(128, (tf // 128) * 128)

    def vmem_bytes(tm_, tf_):
        wb = max(2, weight_buffers)
        return (2 * tm_ * D * xbytes           # x token tile (double-buffered)
                + 2 * D * lbytes               # layer-norm weight
                + wb * D * (2 * tf_) * wbytes  # fused wi_0|wi_1 slice
                + wb * tf_ * D * wbytes        # wo slice
                + 2 * tm_ * D * xbytes         # output tile
                + tm_ * D * wbytes             # cached norm scratch
                + tm_ * D * 4)                 # f32 accumulator

    # Shrink to fit: tf first (does not change HBM weight traffic), then tm.
    while vmem_bytes(tm, tf) > vmem_cap and tf > 128 and tf % 256 == 0:
        tf //= 2
    while vmem_bytes(tm, tf) > vmem_cap and tm > 8:
        tm = max(8, _round_up(tm // 2, 8))

    n_tok = _cdiv(T, tm)
    n_ff = _cdiv(F, tf)
    T_pad = n_tok * tm
    F_pad = n_ff * tf

    # ---- padding (zero rows/cols contribute exactly zero to the result) ----
    x2d = hidden_states.reshape(T, D)
    if T_pad != T:
        x2d = jnp.pad(x2d, ((0, T_pad - T), (0, 0)))
    if F_pad != F:
        wi0 = jnp.pad(wi0, ((0, 0), (0, F_pad - F)))
        wi1 = jnp.pad(wi1, ((0, 0), (0, F_pad - F)))
        wo = jnp.pad(wo, ((0, F_pad - F), (0, 0)))

    # Interleave wi_0 / wi_1 at tf granularity so each grid step fetches one
    # contiguous (D, 2*tf) block: one weight DMA stream + one MXU matmul.
    wi01 = jnp.concatenate(
        [wi0.reshape(D, n_ff, tf), wi1.reshape(D, n_ff, tf)], axis=2
    ).reshape(D, 2 * F_pad)

    lnw2d = ln_weight.reshape(1, D)

    vmem_limit = int(min(vmem_cap,
                         max(int(vmem_bytes(tm, tf) * 1.25), 32 * 1024 * 1024)))

    cost = pl.CostEstimate(
        flops=6 * T_pad * D * F_pad,
        transcendentals=T_pad * F_pad,
        # Weights are re-streamed once per token tile (n_tok times).
        bytes_accessed=(n_tok * 3 * D * F_pad * wbytes
                        + 2 * T_pad * D * xbytes + D * lbytes),
    )

    wspec_kwargs = {}
    if weight_buffers != 2:
        wspec_kwargs = dict(pipeline_mode=pl.Buffered(weight_buffers))

    kernel = functools.partial(_t5_ff_kernel, eps=eps, tf=tf)

    out2d = pl.pallas_call(
        kernel,
        out_shape=jax.ShapeDtypeStruct((T_pad, D), hidden_states.dtype),
        grid_spec=pltpu.PrefetchScalarGridSpec(
            num_scalar_prefetch=0,
            grid=(n_tok, n_ff),
            in_specs=[
                pl.BlockSpec((tm, D), lambda i, f: (i, 0)),      # token tile
                pl.BlockSpec((1, D), lambda i, f: (0, 0)),       # layer-norm weight
                pl.BlockSpec((D, 2 * tf), lambda i, f: (0, f),
                             **wspec_kwargs),                    # fused wi_0|wi_1
                pl.BlockSpec((tf, D), lambda i, f: (f, 0),
                             **wspec_kwargs),                    # wo slice
            ],
            out_specs=pl.BlockSpec((tm, D), lambda i, f: (i, 0)),
            scratch_shapes=[
                pltpu.VMEM((tm, D), wi01.dtype),    # cached normed tokens
                pltpu.VMEM((tm, D), jnp.float32),   # f32 accumulator (+ residual)
            ],
        ),
        compiler_params=pltpu.CompilerParams(
            dimension_semantics=("parallel", "arbitrary"),
            vmem_limit_bytes=vmem_limit,
        ),
        cost_estimate=cost,
    )(x2d, lnw2d, wi01, wo)

    if T_pad != T:
        out2d = out2d[:T]
    return out2d.reshape(B, S, D)


def _reference(hidden_states, ln_weight, wi0, wi1, wo, eps=1e-6):
    x = hidden_states.astype(jnp.float32)
    var = jnp.mean(x * x, axis=-1, keepdims=True)
    norm = x * jax.lax.rsqrt(var + eps) * ln_weight
    h = _gelu_new(norm @ wi0) * (norm @ wi1)
    y = h @ wo
    return hidden_states + y


def _make_inputs(key, B, S, D, FF):
    k_x, k_ln, k_w0, k_w1, k_wo = jax.random.split(key, 5)
    hidden_states = jax.random.normal(k_x, (B, S, D), dtype=jnp.float32)
    ln_weight = 1.0 + 0.1 * jax.random.normal(k_ln, (D,), dtype=jnp.float32)
    # nn.Linear(d_model, d_ff, bias=False).weight has shape (d_ff, d_model);
    # we store the transpose (in, out) so the kernel does x @ W directly.
    wi0 = 0.05 * jax.random.normal(k_w0, (D, FF), dtype=jnp.float32)
    wi1 = 0.05 * jax.random.normal(k_w1, (D, FF), dtype=jnp.float32)
    wo = 0.05 * jax.random.normal(k_wo, (FF, D), dtype=jnp.float32)
    return hidden_states, ln_weight, wi0, wi1, wo


if __name__ == "__main__":
    key = jax.random.PRNGKey(0)
    k1, k2, k3 = jax.random.split(key, 3)

    # 1) Small T5-ish config: batch=2, seq=8, d_model=32, d_ff=64 (single grid step).
    args = _make_inputs(k1, 2, 8, 32, 64)
    out = jax.block_until_ready(t5_layer_ff(*args))
    ref = _reference(*args)
    assert out.shape == (2, 8, 32)
    assert jnp.allclose(out, ref, atol=1e-5, rtol=1e-5), "mismatch (case 1)"

    # 2) Multi-tile grid on both axes (token tiles x d_ff tiles, fused wi interleave).
    args = _make_inputs(k2, 2, 8, 32, 256)
    out = jax.block_until_ready(t5_layer_ff(*args, tm=8, tf=128))
    ref = _reference(*args)
    assert jnp.allclose(out, ref, atol=1e-5, rtol=1e-5), "mismatch (case 2)"

    # 3) Awkward token count -> exercises zero-padding of the token axis.
    args = _make_inputs(k3, 1, 5, 32, 96)
    out = jax.block_until_ready(t5_layer_ff(*args))
    ref = _reference(*args)
    assert out.shape == (1, 5, 32)
    assert jnp.allclose(out, ref, atol=1e-5, rtol=1e-5), "mismatch (case 3)"

    # TODO(synk): LoRA / IA3 / AdapterController branches and training-mode dropout
    # are not modeled; this implements the eval-mode base path only.
    print("KERNEL_OK")
</pallas_src>

<mosaic_0001>
module attributes {stable_mosaic.version = 11 : i64} {
  func.func @_t5_ff_kernel(%arg0: i32, %arg1: i32, %arg2: memref<16x32xf32, #tpu.memory_space<vmem>>, %arg3: memref<1x32xf32, #tpu.memory_space<vmem>>, %arg4: memref<32x128xf32, #tpu.memory_space<vmem>>, %arg5: memref<64x32xf32, #tpu.memory_space<vmem>>, %arg6: memref<16x32xf32, #tpu.memory_space<vmem>>, %arg7: memref<16x32xf32, #tpu.memory_space<vmem>>, %arg8: memref<16x32xf32, #tpu.memory_space<vmem>>) attributes {dimension_semantics = [#tpu.dimension_semantics<parallel>, #tpu.dimension_semantics<arbitrary>], iteration_bounds = array<i64: 1, 1>, scalar_prefetch = 0 : i64, scratch_operands = 2 : i64, tpu.core_type = #tpu.core_type<tc>, window_params = [{transform_indices = @transform_0, window_bounds = array<i64: 16, 32>}, {pipeline_mode = #tpu.pipeline_mode<synchronous>, transform_indices = @transform_1, window_bounds = array<i64: 1, 32>}, {transform_indices = @transform_2, window_bounds = array<i64: 32, 128>}, {transform_indices = @transform_3, window_bounds = array<i64: 64, 32>}, {transform_indices = @transform_4, window_bounds = array<i64: 16, 32>}]} {
    %c0_i32 = arith.constant 0 : i32
    %0 = arith.cmpi eq, %arg1, %c0_i32 : i32
    %1 = arith.extui %0 : i1 to i32
    %c0_i32_0 = arith.constant 0 : i32
    %2 = arith.cmpi ne, %1, %c0_i32_0 : i32
    scf.if %2 {
      %c0_17 = arith.constant 0 : index
      %c0_18 = arith.constant 0 : index
      %30 = vector.load %arg2[%c0_17, %c0_18] : memref<16x32xf32, #tpu.memory_space<vmem>>, vector<16x32xf32>
      %31 = arith.mulf %30, %30 : vector<16x32xf32>
      %cst_19 = arith.constant dense<0.000000e+00> : vector<16xf32>
      %32 = vector.multi_reduction <add>, %31, %cst_19 [1] : vector<16x32xf32> to vector<16xf32>
      %33 = vector.shape_cast %32 : vector<16xf32> to vector<16x1xf32>
      %cst_20 = arith.constant 3.200000e+01 : f32
      %34 = vector.broadcast %cst_20 : f32 to vector<16x1xf32>
      %35 = arith.divf %33, %34 : vector<16x1xf32>
      %cst_21 = arith.constant 9.99999997E-7 : f32
      %36 = vector.broadcast %cst_21 : f32 to vector<16x1xf32>
      %37 = arith.addf %35, %36 : vector<16x1xf32>
      %38 = math.rsqrt %37 : vector<16x1xf32>
      %39 = vector.broadcast %38 : vector<16x1xf32> to vector<16x32xf32>
      %40 = arith.mulf %30, %39 : vector<16x32xf32>
      %c0_22 = arith.constant 0 : index
      %c0_23 = arith.constant 0 : index
      %41 = vector.load %arg3[%c0_22, %c0_23] : memref<1x32xf32, #tpu.memory_space<vmem>>, vector<1x32xf32>
      %42 = vector.broadcast %41 : vector<1x32xf32> to vector<16x32xf32>
      %43 = arith.mulf %40, %42 : vector<16x32xf32>
      %c0_24 = arith.constant 0 : index
      %c0_25 = arith.constant 0 : index
      %44 = vector.load %arg7[%c0_24, %c0_25] : memref<16x32xf32, #tpu.memory_space<vmem>>, vector<16x32xf32>
      tpu.vector_store %arg7[%c0_24, %c0_25], %43 {strides = array<i32>} : memref<16x32xf32, #tpu.memory_space<vmem>>, vector<16x32xf32>,
      %c0_26 = arith.constant 0 : index
      %c0_27 = arith.constant 0 : index
      %45 = vector.load %arg8[%c0_26, %c0_27] : memref<16x32xf32, #tpu.memory_space<vmem>>, vector<16x32xf32>
      tpu.vector_store %arg8[%c0_26, %c0_27], %30 {strides = array<i32>} : memref<16x32xf32, #tpu.memory_space<vmem>>, vector<16x32xf32>,
    } else {
    }
    %c0 = arith.constant 0 : index
    %c0_1 = arith.constant 0 : index
    %3 = vector.load %arg7[%c0, %c0_1] : memref<16x32xf32, #tpu.memory_space<vmem>>, vector<16x32xf32>
    %c0_2 = arith.constant 0 : index
    %c0_3 = arith.constant 0 : index
    %4 = vector.load %arg4[%c0_2, %c0_3] : memref<32x128xf32, #tpu.memory_space<vmem>>, vector<32x128xf32>
    %cst = arith.constant dense<0.000000e+00> : vector<16x128xf32>
    %5 = tpu.matmul %3, %4, %cst {dimension_numbers = #tpu.dot_dimension_numbers<[1], [0], [0], [1], [0, 0, 1, 1], [], []>} : vector<16x32xf32>, vector<32x128xf32>, vector<16x128xf32> -> vector<16x128xf32>
    %6 = vector.extract_strided_slice %5 {offsets = [0, 0], sizes = [16, 64], strides = [1, 1]} : vector<16x128xf32> to vector<16x64xf32>
    %cst_4 = arith.constant 5.000000e-01 : f32
    %7 = vector.broadcast %cst_4 : f32 to vector<16x64xf32>
    %8 = arith.mulf %7, %6 : vector<16x64xf32>
    %cst_5 = arith.constant 4.471500e-02 : f32
    %9 = vector.broadcast %cst_5 : f32 to vector<16x64xf32>
    %10 = arith.mulf %9, %6 : vector<16x64xf32>
    %11 = arith.mulf %10, %6 : vector<16x64xf32>
    %12 = arith.mulf %11, %6 : vector<16x64xf32>
    %13 = arith.addf %6, %12 : vector<16x64xf32>
    %cst_6 = arith.constant 0.797884583 : f32
    %14 = vector.broadcast %cst_6 : f32 to vector<16x64xf32>
    %15 = arith.mulf %14, %13 : vector<16x64xf32>
    %16 = math.tanh %15 : vector<16x64xf32>
    %cst_7 = arith.constant 1.000000e+00 : f32
    %17 = vector.broadcast %cst_7 : f32 to vector<16x64xf32>
    %18 = arith.addf %17, %16 : vector<16x64xf32>
    %19 = arith.mulf %8, %18 : vector<16x64xf32>
    %20 = vector.extract_strided_slice %5 {offsets = [0, 64], sizes = [16, 64], strides = [1, 1]} : vector<16x128xf32> to vector<16x64xf32>
    %21 = arith.mulf %19, %20 : vector<16x64xf32>
    %c0_8 = arith.constant 0 : index
    %c0_9 = arith.constant 0 : index
    %22 = vector.load %arg8[%c0_8, %c0_9] : memref<16x32xf32, #tpu.memory_space<vmem>>, vector<16x32xf32>
    %c0_10 = arith.constant 0 : index
    %c0_11 = arith.constant 0 : index
    %23 = vector.load %arg5[%c0_10, %c0_11] : memref<64x32xf32, #tpu.memory_space<vmem>>, vector<64x32xf32>
    %cst_12 = arith.constant dense<0.000000e+00> : vector<16x32xf32>
    %24 = tpu.matmul %21, %23, %cst_12 {dimension_numbers = #tpu.dot_dimension_numbers<[1], [0], [0], [1], [0, 0, 1, 1], [], []>} : vector<16x64xf32>, vector<64x32xf32>, vector<16x32xf32> -> vector<16x32xf32>
    %25 = arith.addf %22, %24 : vector<16x32xf32>
    %c0_13 = arith.constant 0 : index
    %c0_14 = arith.constant 0 : index
    %26 = vector.load %arg8[%c0_13, %c0_14] : memref<16x32xf32, #tpu.memory_space<vmem>>, vector<16x32xf32>
    tpu.vector_store %arg8[%c0_13, %c0_14], %25 {strides = array<i32>} : memref<16x32xf32, #tpu.memory_space<vmem>>, vector<16x32xf32>,
    %c0_i32_15 = arith.constant 0 : i32
    %27 = arith.cmpi eq, %arg1, %c0_i32_15 : i32
    %28 = arith.extui %27 : i1 to i32
    %c0_i32_16 = arith.constant 0 : i32
    %29 = arith.cmpi ne, %28, %c0_i32_16 : i32
    scf.if %29 {
      %c0_17 = arith.constant 0 : index
      %c0_18 = arith.constant 0 : index
      %30 = vector.load %arg8[%c0_17, %c0_18] : memref<16x32xf32, #tpu.memory_space<vmem>>, vector<16x32xf32>
      %c0_19 = arith.constant 0 : index
      %c0_20 = arith.constant 0 : index
      %31 = vector.load %arg6[%c0_19, %c0_20] : memref<16x32xf32, #tpu.memory_space<vmem>>, vector<16x32xf32>
      tpu.vector_store %arg6[%c0_19, %c0_20], %30 {strides = array<i32>} : memref<16x32xf32, #tpu.memory_space<vmem>>, vector<16x32xf32>,
    } else {
    }
    return
  }
  func.func @transform_0(%arg0: i32, %arg1: i32) -> (i32, i32) {
    %c0_i32 = arith.constant 0 : i32
    %c0_i32_0 = arith.constant 0 : i32
    return %arg0, %c0_i32 : i32, i32
  }
  func.func @transform_1(%arg0: i32, %arg1: i32) -> (i32, i32) {
    %c0_i32 = arith.constant 0 : i32
    %c0_i32_0 = arith.constant 0 : i32
    %c0_i32_1 = arith.constant 0 : i32
    return %c0_i32, %c0_i32_0 : i32, i32
  }
  func.func @transform_2(%arg0: i32, %arg1: i32) -> (i32, i32) {
    %c0_i32 = arith.constant 0 : i32
    %c0_i32_0 = arith.constant 0 : i32
    return %c0_i32, %arg1 : i32, i32
  }
  func.func @transform_3(%arg0: i32, %arg1: i32) -> (i32, i32) {
    %c0_i32 = arith.constant 0 : i32
    %c0_i32_0 = arith.constant 0 : i32
    return %arg1, %c0_i32 : i32, i32
  }
  func.func @transform_4(%arg0: i32, %arg1: i32) -> (i32, i32) {
    %c0_i32 = arith.constant 0 : i32
    %c0_i32_0 = arith.constant 0 : i32
    return %arg0, %c0_i32 : i32, i32
  }
}

</mosaic_0001>

<bundles_post_ra>
// kernel: tpu_custom_call.1
= control target key start
LH: loop header
LB: loop body
LE: loop exit
PB: predicated region body
PF: predicated region fallthrough
CT: control target
= control target key end

     0   :  { %vm26_vm0 = vcmask 261120   ;;  %s464_s0 = inlined_call_operand.vmem [shape: f32[16,32], index: 0, kind: input, shape index: {}]   ;;  %s465_s1 = inlined_call_operand.vmem [shape: f32[1,32], index: 1, kind: input, shape index: {}]   ;;  %s466_s2 = inlined_call_operand.vmem [shape: f32[32,128], index: 2, kind: input, shape index: {}]   ;;  %s467_s3 = inlined_call_operand.vmem [shape: f32[64,32], index: 3, kind: input, shape index: {}]   ;;  %s468_s4 = inlined_call_operand.hbm [shape: f32[16,32], index: 4, kind: output, shape index: {}]  }
   0x1   :  { %v22_v0 = vld [vmem:[%s464_s0] sm:$0xff]  ;;  %v23_v1 = vld [vmem:[%s464_s0 + $0x8] sm:$0xff] }
   0x2   :  { %v24_v2 = vmul.f32 %v22_v0, %v22_v0  ;;  %53 = vst.msk [vmem:[#allocation3] sm:$0xff] %vm26_vm0, %v22_v0  ;;  %v25_v3 = vmul.f32 %v23_v1, %v23_v1  ;;  %54 = vst.msk [vmem:[#allocation3 + $0x8] sm:$0xff] %vm26_vm0, %v23_v1 }
   0x3   :  { %9 = vsyncpa [#allocation5], 0  ;;  %v60_v6 = vld [vmem:[%s466_s2 + $0x18] sm:$0xff]  ;;  %v59_v7 = vld [vmem:[%s466_s2 + $0x10] sm:$0xff]  ;;  %s375_s16 = smov 64   ;;  %vm181_vm1 = vcmask 523264  }
   0x4   :  { %v27_v4 = vsel %vm26_vm0, %v24_v2, 0.0  ;;  %v30_v5 = vsel %vm26_vm0, %v25_v3, 0.0  ;;  %311 = vmatprep.subr.mxu0 %v60_v6  ;;  %v58_v8 = vld [vmem:[%s466_s2 + $0x8] sm:$0xff]  ;;  %v57_v9 = vld [vmem:[%s466_s2] sm:$0xff]  ;;  %v180_v25 = vld [vmem:[%s467_s3 + $0x38] sm:$0xff] }
   0x5   :  { %28 = vadd.xlane.f32.xlu0 %v27_v4  ;;  %312 = vmatpush3.msra.mxu0 %v60_v6  ;;  %v290_v17 = vld [vmem:[%s465_s1] ss:$0 sm:$0xff]  ;;  %v179_v26 = vld [vmem:[%s467_s3 + $0x30] sm:$0xff]  ;;  %v178_v27 = vld [vmem:[%s467_s3 + $0x28] sm:$0xff] }
   0x6   :  { %313 = vmatprep.subr.mxu0 %v59_v7  ;;  %322 = vmatprep.subr.mxu1 %v180_v25  ;;  %v177_v28 = vld [vmem:[%s467_s3 + $0x20] sm:$0xff]  ;;  %v176_v29 = vld [vmem:[%s467_s3 + $0x18] sm:$0xff]  ;;  %v175_v30 = vld [vmem:[%s467_s3 + $0x10] sm:$0xff] }
   0x7   :  { %314 = vmatpush3.msra.mxu0 %v59_v7  ;;  %323 = vmatpush3.msra.mxu1 %v180_v25  ;;  %v174_v31 = vld [vmem:[%s467_s3 + $0x8] sm:$0xff]  ;;  %v173_v32 = vld [vmem:[%s467_s3] sm:$0xff]  ;;  %s376_s3 = smov [#allocation4]  }
   0x8   :  { %315 = vmatprep.subr.mxu0 %v58_v8  ;;  %324 = vmatprep.subr.mxu1 %v179_v26  ;;  %s279_s17 = sshll.u32 %s376_s3, 4  ;;  %s280_s17 = int_to_ptr.vmem [resolvable:$true] %s279_s17 }
   0x9   :  { %31 = vadd.xlane.f32.xlu0 %v30_v5  ;;  %316 = vmatpush3.msra.mxu0 %v58_v8  ;;  %v172_v57 = vld [vmem:[#allocation3 + $0x8] sm:$0xff]  ;;  %v171_v59 = vld [vmem:[#allocation3] sm:$0xff]  ;;  %s353_s18 = scalar_lea.vmem %s280_s17, 256  ;;  %p358_p1 = scmp.lt.s32.totalorder %s280_s17, %s280_s17 }
   0xa   :  { %317 = vmatprep.subr.mxu0 %v57_v9  ;;  %325 = vmatpush3.msra.mxu1 %v179_v26  ;;  %p354_p0 = scmp.ne.s32.totalorder %s280_s17, %s353_s18  ;;  %p359_p2 = scmp.lt.s32.totalorder %s353_s18, %s353_s18 }
   0xb   :  { %318 = vmatpush3.msra.mxu0 %v57_v9  ;;  %326 = vmatprep.subr.mxu1 %v178_v27 }
   0xc   :  { %327 = vmatpush3.msra.mxu1 %v178_v27  ;;  %p360_p3 = por %p359_p2, %p358_p1 }
   0xd   :  { %328 = vmatprep.subr.mxu1 %v177_v28 }
   0xe   :  { %329 = vmatpush3.msra.mxu1 %v177_v28  ;;  %p361_p4 = pnand %p360_p3, %p354_p0 }
   0xf   :  { %330 = vmatprep.subr.mxu1 %v176_v29 }
  0x10   :  { %331 = vmatpush3.msra.mxu1 %v176_v29 }
  0x11   :  { %332 = vmatprep.subr.mxu1 %v175_v30 }
  0x12   :  { %333 = vmatpush3.msra.mxu1 %v175_v30 }
  0x13   :  { %334 = vmatprep.subr.mxu1 %v174_v31 }
  0x14   :  { %335 = vmatpush3.msra.mxu1 %v174_v31 }
  0x15   :  { %336 = vmatprep.subr.mxu1 %v173_v32 }
  0x16   :  { %337 = vmatpush3.msra.mxu1 %v173_v32 }
  0x8e   :  { %v29_v10 = vpop.xlane.xlu0 %28 }
  0x8f   :  { %v34_v11 = vmul.f32 0.03125, %v29_v10 }
  0x91   :  { %v36_v12 = vadd.f32 1e-06, %v34_v11 }
  0x92   :  { %v32_v13 = vpop.xlane.xlu0 %31 }
  0x93   :  { %345 = vrsqrt.f32 %v36_v12  ;;  %v35_v14 = vmul.f32 0.03125, %v32_v13 }
  0x95   :  { %v37_v15 = vadd.f32 1e-06, %v35_v14 }
  0x97   :  { %347 = vrsqrt.f32 %v37_v15 }
  0xa0   :  { %v346_v16 = vpop.eup %345 }
  0xa1   :  { %v40_v18 = vmul.f32 %v346_v16, %v22_v0 }
  0xa3   :  { %v49_v19 = vmul.f32 %v290_v17, %v40_v18 }
  0xa4   :  { %v348_v20 = vpop.eup %347 }
  0xa5   :  { %51 = vst.msk [vmem:[#allocation2] sm:$0xff] %vm26_vm0, %v49_v19  ;;  %v41_v21 = vmul.f32 %v348_v20, %v23_v1 }
  0xa7   :  { %v50_v22 = vmul.f32 %v290_v17, %v41_v21 }
  0xa9   :  { %52 = vst.msk [vmem:[#allocation2 + $0x8] sm:$0xff] %vm26_vm0, %v50_v22 }
  0xac   :  { %v55_v23 = vld [vmem:[#allocation2] sm:$0xff] }
  0xad   :  { %319 = vmatprep.mubr.msk.f32.mxu0 %vm26_vm0, %v55_v23 }
  0xb0   :  { %v56_v24 = vld [vmem:[#allocation2 + $0x8] sm:$0xff] }
  0xb1   :  { %320 = vmatmul.mubr.msk.f32.vlgmr.msra.gmra.mxu0 %vm26_vm0, %v56_v24 }
 0x171   :  { %v321_v33 = vpop.f32.mrf.mxu0 }
 0x172   :  { %v146_v36 = vmul.f32 0.044715, %v321_v33  ;;  %v144_v53 = vmul.f32 0.5, %v321_v33 }
 0x173   :  { %v134_v34 = vpop.f32.mrf.mxu0 }
 0x174   :  { %163 = vrot.lane.b32.xlu1 %v134_v34, %s375_s16  ;;  %v145_v35 = vmul.f32 0.044715, %v134_v34  ;;  %v148_v38 = vmul.f32 %v321_v33, %v146_v36  ;;  %v143_v48 = vmul.f32 0.5, %v134_v34 }
 0x176   :  { %v147_v37 = vmul.f32 %v145_v35, %v134_v34  ;;  %v150_v41 = vmul.f32 %v321_v33, %v148_v38 }
 0x178   :  { %165 = vrot.lane.b32.xlu1 %v321_v33, %s375_s16  ;;  %v149_v39 = vmul.f32 %v147_v37, %v134_v34  ;;  %v152_v43 = vadd.f32 %v321_v33, %v150_v41 }
 0x17a   :  { %v151_v40 = vadd.f32 %v149_v39, %v134_v34  ;;  %v154_v44 = vmul.f32 0.7978846, %v152_v43 }
 0x17c   :  { %v153_v42 = vmul.f32 0.7978846, %v151_v40 }
 0x17e   :  { %349 = vtanh.f32 %v153_v42 }
 0x17f   :  { %351 = vtanh.f32 %v154_v44 }
 0x18b   :  { %v350_v45 = vpop.eup %349 }
 0x18c   :  { %v157_v46 = vadd.f32 1.0, %v350_v45  ;;  %v352_v47 = vpop.eup %351 }
 0x18d   :  { %v158_v50 = vadd.f32 1.0, %v352_v47 }
 0x18e   :  { %v159_v49 = vmul.f32 %v157_v46, %v143_v48 }
 0x18f   :  { %v160_v54 = vmul.f32 %v158_v50, %v144_v53 }
 0x1e6   :  { %v164_v51 = vpop.permute.xlu1 %163 }
 0x1e7   :  { %v169_v52 = vmul.f32 %v164_v51, %v159_v49 }
 0x1e9   :  { %338 = vmatprep.mubr.msk.f32.mxu1 %vm181_vm1, %v169_v52 }
 0x1ea   :  { %v166_v55 = vpop.permute.xlu1 %165 }
 0x1eb   :  { %v170_v56 = vmul.f32 %v166_v55, %v160_v54 }
 0x1ed   :  { %339 = vmatmul.mubr.msk.f32.vlgmr.msra.gmra.mxu1 %vm181_vm1, %v170_v56 }
 0x2ad   :  { %v340_v58 = vpop.f32.mrf.mxu1 }
 0x2ae   :  { %v264_v60 = vadd.f32 %v340_v58, %v172_v57 }
 0x2af   :  { %v254_v61 = vpop.f32.mrf.mxu1 }
 0x2b0   :  { %266 = vst.msk [vmem:[#allocation3 + $0x8] sm:$0xff] %vm26_vm0, %v264_v60  ;;  %v263_v62 = vadd.f32 %v254_v61, %v171_v59 }
 0x2b2   :  { %265 = vst.msk [vmem:[#allocation3] sm:$0xff] %vm26_vm0, %v263_v62 }
 0x2b7   :  { %v271_v63 = vld [vmem:[#allocation3 + $0x8] sm:$0xff] }
 0x2b8   :  { %273 = vst.msk [vmem:[#allocation4 + $0x8] sm:$0xff] %vm26_vm0, %v271_v63 }
 0x2b9   :  { %v270_v0 = vld [vmem:[#allocation3] sm:$0xff] }
 0x2ba   :  { %272 = vst.msk [vmem:[#allocation4] sm:$0xff] %vm26_vm0, %v270_v0 }
 0x2bb   :  { %364 = shalt.err (!%p361_p4)
}
 0x2bc   :  { %s377_s19 = smov 128   ;;  %s378_s20 = smov 8  }
 0x2bd   :  { %285 = dma.vmem_to_hbm [thread:$0]  %s280_s17, 256, %s468_s4, [#allocation5], %s377_s19, %s377_s19, %s378_s20  }
 0x2be   :  { %373 = dma.done.wait [#allocation5], 256  }
 0x2bf   :  { %374 = vsyncadd [#allocation5], 4294967040 }
 0x2c0   :  { %289 = vsyncpa [#allocation5], 1 }

</bundles_post_ra>
